<compile_context>
chip_gen: v7x
topology: tpu7x:2x2x1
jax: 0.10.0
libtpu: 0.0.40
codegen_flags: <defaults>
</compile_context>

<pallas_src>
from functools import partial

import jax
import jax.numpy as jnp
from jax.experimental import pallas as pl
from jax.experimental.pallas import tpu as pltpu


def lstm_classifier_kernel(emb_ref,      # (T*Bp, 2E) bf16  [x_t | x_{T-1-t}] rows
                           wih_ref,      # (2E, 8H)   bf16  block/interleaved input weights (+zeros)
                           b_ref,        # (1, 8H)    f32   interleaved b_ih+b_hh (both dirs)
                           whh_ref,      # (2H, 8H)   bf16  block-diagonal recurrent weight
                           wout_ref,     # (2H, Opad) bf16  output weight, lane-padded with zeros
                           bout_ref,     # (1, Opad)  f32   output bias, pad lanes = -1e30
                           out_ref):     # (Bp, Opad) f32   softmax scores (lane-dense)
    TB = emb_ref.shape[0]
    H2 = whh_ref.shape[0]           # 2H
    H = H2 // 2
    Bp = out_ref.shape[0]
    T = TB // Bp

    whh = whh_ref[...]              # resident (2H, 8H) bf16

    # --- Hoisted input projection (off the serial critical path) -------------
    # One MXU matmul covering all T steps and BOTH directions, biases folded.
    # Column layout (per-gate interleaved): [i_f|i_b|f_f|f_b|g_f|g_b|o_f|o_b].
    xg = (jnp.dot(emb_ref[...], wih_ref[...],
                  preferred_element_type=jnp.float32)
          + b_ref[...])                                     # (T*Bp, 8H) f32

    # Fused bidirectional state: columns [0:H] = forward, [H:2H] = backward.
    h = jnp.zeros((Bp, H2), jnp.float32)
    c = jnp.zeros((Bp, H2), jnp.float32)

    # --- Fused, fully unrolled recurrence: one matmul + one activation pass
    # per step for BOTH directions.  Iteration t advances fwd step t and bwd
    # step T-1-t (the x slice was time-aligned in the wrapper).
    for t in range(T):
        x_cat = xg[t * Bp:(t + 1) * Bp, :]                  # aligned 8-row view
        gates = x_cat + jnp.dot(h.astype(jnp.bfloat16), whh,
                                preferred_element_type=jnp.float32)  # (Bp, 8H)
        sig = jax.nn.sigmoid(gates)                         # one EUP pass (i|f|o)
        g = jnp.tanh(gates[:, 4 * H:6 * H])                 # tanh on g cols only
        i = sig[:, 0:2 * H]
        f = sig[:, 2 * H:4 * H]
        o = sig[:, 6 * H:8 * H]
        c = f * c + i * g
        h = o * jnp.tanh(c)

    # --- Output projection (single matmul, no lane concat) + exact softmax ---
    logits = (jnp.dot(h.astype(jnp.bfloat16), wout_ref[...],
                      preferred_element_type=jnp.float32)
              + bout_ref[...])                              # (Bp, Opad)
    logits = logits - jnp.max(logits, axis=1, keepdims=True)
    e = jnp.exp(logits)                                     # pad lanes -> 0
    out_ref[...] = e / jnp.sum(e, axis=1, keepdims=True)


def pack_params(params):
    """One-time packing: gate interleave, block-diagonal Whh, lane padding,
    bf16 casts.  Done outside the per-call path (per review)."""
    E = params["wih_f"].shape[0]
    H = params["whh_f"].shape[0]
    O = params["wout"].shape[1]
    O_pad = ((O + 127) // 128) * 128

    def interleave(a_f, a_b):
        # (..., 4H) x2 -> (..., 8H) with per-gate interleaving [k_f | k_b].
        parts = []
        for k in range(4):
            parts.append(a_f[..., k * H:(k + 1) * H])
            parts.append(a_b[..., k * H:(k + 1) * H])
        return jnp.concatenate(parts, axis=-1)

    zE = jnp.zeros((E, 4 * H), jnp.float32)
    zH = jnp.zeros((H, 4 * H), jnp.float32)
    # Input weight: rows 0:E act on x_t (fwd cols), rows E:2E on x_{T-1-t} (bwd).
    wih_big = interleave(jnp.concatenate([params["wih_f"], zE], axis=0),
                         jnp.concatenate([zE, params["wih_b"]], axis=0))   # (2E, 8H)
    # Recurrent weight: block-diagonal over the fused [h_f | h_b] state.
    whh_bd = interleave(jnp.concatenate([params["whh_f"], zH], axis=0),
                        jnp.concatenate([zH, params["whh_b"]], axis=0))    # (2H, 8H)
    b_packed = interleave(params["b_f"], params["b_b"])                    # (1, 8H)

    wout_pad = jnp.zeros((2 * H, O_pad), jnp.float32).at[:, :O].set(params["wout"])
    bout_pad = jnp.full((1, O_pad), -1e30, jnp.float32).at[:, :O].set(params["bout"])

    return {
        "embedding": params["embedding"].astype(jnp.bfloat16),
        "wih_big": wih_big.astype(jnp.bfloat16),
        "b_packed": b_packed,                        # f32
        "whh_bd": whh_bd.astype(jnp.bfloat16),
        "wout_pad": wout_pad.astype(jnp.bfloat16),
        "bout_pad": bout_pad,                        # f32
    }


@partial(jax.jit, static_argnames=("output_dim",))
def lstm_classifier_forward(input_seq, input_lengths, packed, *, output_dim):
    """input_seq: (T, B) int32 token ids (seq-first, PyTorch convention)."""
    del input_lengths  # TODO(synk): variable-length (packed-sequence) handling
    T, B = input_seq.shape
    E = packed["embedding"].shape[1]
    O_pad = packed["wout_pad"].shape[1]
    Bp = ((B + 7) // 8) * 8                       # sublane-aligned batch

    ids = input_seq
    if Bp != B:
        ids = jnp.pad(input_seq, ((0, 0), (0, Bp - B)))
    emb = jnp.take(packed["embedding"], ids, axis=0)            # (T, Bp, E) bf16
    # Row block t holds [x_t | x_{T-1-t}]: the fused fwd/bwd recurrence then
    # reads a single contiguous, sublane-aligned slice per step.
    emb_aligned = jnp.concatenate([emb, emb[::-1]], axis=-1)    # (T, Bp, 2E)
    emb_flat = emb_aligned.reshape(T * Bp, 2 * E)

    vmem = pl.BlockSpec(memory_space=pltpu.MemorySpace.VMEM)
    out = pl.pallas_call(
        lstm_classifier_kernel,
        out_shape=jax.ShapeDtypeStruct((Bp, O_pad), jnp.float32),
        in_specs=[vmem] * 6,
        out_specs=vmem,
    )(emb_flat, packed["wih_big"], packed["b_packed"],
      packed["whh_bd"], packed["wout_pad"], packed["bout_pad"])
    return out[:B, :output_dim]


def reference_forward(input_seq, params):
    """Pure-JAX f32 reference of the PyTorch module's forward (no Pallas)."""
    emb = jnp.take(params["embedding"], input_seq, axis=0)   # (T, B, E)
    T, B, _ = emb.shape
    H = params["whh_f"].shape[0]

    def cell(x, h, c, wih, whh, b):
        z = x @ wih + h @ whh + b
        i = jax.nn.sigmoid(z[:, 0 * H:1 * H])
        f = jax.nn.sigmoid(z[:, 1 * H:2 * H])
        g = jnp.tanh(z[:, 2 * H:3 * H])
        o = jax.nn.sigmoid(z[:, 3 * H:4 * H])
        c = f * c + i * g
        h = o * jnp.tanh(c)
        return h, c

    h_f = jnp.zeros((B, H), jnp.float32)
    c_f = jnp.zeros((B, H), jnp.float32)
    for t in range(T):
        h_f, c_f = cell(emb[t], h_f, c_f,
                        params["wih_f"], params["whh_f"], params["b_f"])
    h_b = jnp.zeros((B, H), jnp.float32)
    c_b = jnp.zeros((B, H), jnp.float32)
    for t in range(T - 1, -1, -1):
        h_b, c_b = cell(emb[t], h_b, c_b,
                        params["wih_b"], params["whh_b"], params["b_b"])
    logits = jnp.concatenate([h_f, h_b], axis=1) @ params["wout"] + params["bout"]
    return jax.nn.softmax(logits, axis=1)


def init_params(key, vocab_size, embedding_dim, hidden_dim, output_dim):
    ks = jax.random.split(key, 12)
    E, H, O, V = embedding_dim, hidden_dim, output_dim, vocab_size
    scale = 0.1

    def rn(k, shape):
        return scale * jax.random.normal(k, shape, dtype=jnp.float32)

    params = {
        "embedding": rn(ks[0], (V, E)),
        # forward direction (PyTorch weight_ih_l0 (4H,E) transposed -> (E,4H))
        "wih_f": rn(ks[1], (E, 4 * H)),
        "whh_f": rn(ks[2], (H, 4 * H)),
        "b_f": rn(ks[3], (1, 4 * H)) + rn(ks[4], (1, 4 * H)),   # b_ih + b_hh
        # backward direction
        "wih_b": rn(ks[5], (E, 4 * H)),
        "whh_b": rn(ks[6], (H, 4 * H)),
        "b_b": rn(ks[7], (1, 4 * H)) + rn(ks[8], (1, 4 * H)),
        # output linear: (2H, O) (transposed from PyTorch (O, 2H)), rows [fwd; bwd]
        "wout": rn(ks[9], (2 * H, O)),
        "bout": rn(ks[10], (1, O)),
    }
    return params


if __name__ == "__main__":
    # config: n_layers=1, bidirectional=True, dropout inactive (eval / 1 layer)
    T, B = 8, 2
    vocab_size, embedding_dim, hidden_dim, output_dim = 50, 16, 32, 4

    key = jax.random.PRNGKey(0)
    k_param, k_seq = jax.random.split(key)
    params = init_params(k_param, vocab_size, embedding_dim, hidden_dim,
                         output_dim)
    packed = pack_params(params)   # one-time weight packing (not per call)

    input_seq = jax.random.randint(k_seq, (T, B), 0, vocab_size, dtype=jnp.int32)
    input_lengths = jnp.full((B,), T, dtype=jnp.int32)   # ignored by forward

    scores = lstm_classifier_forward(input_seq, input_lengths, packed,
                                     output_dim=output_dim)
    jax.block_until_ready(scores)

    ref = reference_forward(input_seq, params)

    assert scores.shape == (B, output_dim)
    # exact softmax divide -> rows sum to 1 up to f32 rounding
    assert jnp.allclose(jnp.sum(scores, axis=1), 1.0, atol=1e-3)
    # bf16 matmul operands (f32 accumulation) -> small drift vs f32 reference
    assert jnp.allclose(scores, ref, atol=2e-2), (scores, ref)
    print("KERNEL_OK")
</pallas_src>

<mosaic_0001>
module attributes {stable_mosaic.version = 11 : i64} {
  func.func @lstm_classifier_kernel(%arg0: memref<64x32xbf16, #tpu.memory_space<vmem>>, %arg1: memref<32x256xbf16, #tpu.memory_space<vmem>>, %arg2: memref<1x256xf32, #tpu.memory_space<vmem>>, %arg3: memref<64x256xbf16, #tpu.memory_space<vmem>>, %arg4: memref<64x128xbf16, #tpu.memory_space<vmem>>, %arg5: memref<1x128xf32, #tpu.memory_space<vmem>>, %arg6: memref<8x128xf32, #tpu.memory_space<vmem>>) attributes {dimension_semantics = [], scalar_prefetch = 0 : i64, scratch_operands = 0 : i64, tpu.core_type = #tpu.core_type<tc>} {
    %c0 = arith.constant 0 : index
    %c0_0 = arith.constant 0 : index
    %0 = vector.load %arg3[%c0, %c0_0] : memref<64x256xbf16, #tpu.memory_space<vmem>>, vector<64x256xbf16>
    %c0_1 = arith.constant 0 : index
    %c0_2 = arith.constant 0 : index
    %1 = vector.load %arg0[%c0_1, %c0_2] : memref<64x32xbf16, #tpu.memory_space<vmem>>, vector<64x32xbf16>
    %c0_3 = arith.constant 0 : index
    %c0_4 = arith.constant 0 : index
    %2 = vector.load %arg1[%c0_3, %c0_4] : memref<32x256xbf16, #tpu.memory_space<vmem>>, vector<32x256xbf16>
    %cst = arith.constant dense<0.000000e+00> : vector<64x256xf32>
    %3 = tpu.matmul %1, %2, %cst {dimension_numbers = #tpu.dot_dimension_numbers<[1], [0], [0], [1], [0, 0, 1, 1], [], []>} : vector<64x32xbf16>, vector<32x256xbf16>, vector<64x256xf32> -> vector<64x256xf32>
    %c0_5 = arith.constant 0 : index
    %c0_6 = arith.constant 0 : index
    %4 = vector.load %arg2[%c0_5, %c0_6] : memref<1x256xf32, #tpu.memory_space<vmem>>, vector<1x256xf32>
    %5 = vector.broadcast %4 : vector<1x256xf32> to vector<64x256xf32>
    %6 = arith.addf %3, %5 : vector<64x256xf32>
    %cst_7 = arith.constant 0.000000e+00 : f32
    %7 = vector.broadcast %cst_7 : f32 to vector<8x64xf32>
    %cst_8 = arith.constant 0.000000e+00 : f32
    %8 = vector.broadcast %cst_8 : f32 to vector<8x64xf32>
    %9 = vector.extract_strided_slice %6 {offsets = [0, 0], sizes = [8, 256], strides = [1, 1]} : vector<64x256xf32> to vector<8x256xf32>
    %10 = arith.truncf %7 : vector<8x64xf32> to vector<8x64xbf16>
    %cst_9 = arith.constant dense<0.000000e+00> : vector<8x256xf32>
    %11 = tpu.matmul %10, %0, %cst_9 {dimension_numbers = #tpu.dot_dimension_numbers<[1], [0], [0], [1], [0, 0, 1, 1], [], []>} : vector<8x64xbf16>, vector<64x256xbf16>, vector<8x256xf32> -> vector<8x256xf32>
    %12 = arith.addf %9, %11 : vector<8x256xf32>
    %13 = arith.negf %12 : vector<8x256xf32>
    %14 = math.exp %13 : vector<8x256xf32>
    %cst_10 = arith.constant 1.000000e+00 : f32
    %15 = vector.broadcast %cst_10 : f32 to vector<8x256xf32>
    %16 = arith.addf %15, %14 : vector<8x256xf32>
    %17 = arith.divf %15, %16 : vector<8x256xf32>
    %18 = vector.extract_strided_slice %12 {offsets = [0, 128], sizes = [8, 64], strides = [1, 1]} : vector<8x256xf32> to vector<8x64xf32>
    %19 = math.tanh %18 : vector<8x64xf32>
    %20 = vector.extract_strided_slice %17 {offsets = [0, 0], sizes = [8, 64], strides = [1, 1]} : vector<8x256xf32> to vector<8x64xf32>
    %21 = vector.extract_strided_slice %17 {offsets = [0, 64], sizes = [8, 64], strides = [1, 1]} : vector<8x256xf32> to vector<8x64xf32>
    %22 = vector.extract_strided_slice %17 {offsets = [0, 192], sizes = [8, 64], strides = [1, 1]} : vector<8x256xf32> to vector<8x64xf32>
    %23 = arith.mulf %21, %8 : vector<8x64xf32>
    %24 = arith.mulf %20, %19 : vector<8x64xf32>
    %25 = arith.addf %23, %24 : vector<8x64xf32>
    %26 = math.tanh %25 : vector<8x64xf32>
    %27 = arith.mulf %22, %26 : vector<8x64xf32>
    %28 = vector.extract_strided_slice %6 {offsets = [8, 0], sizes = [8, 256], strides = [1, 1]} : vector<64x256xf32> to vector<8x256xf32>
    %29 = arith.truncf %27 : vector<8x64xf32> to vector<8x64xbf16>
    %cst_11 = arith.constant dense<0.000000e+00> : vector<8x256xf32>
    %30 = tpu.matmul %29, %0, %cst_11 {dimension_numbers = #tpu.dot_dimension_numbers<[1], [0], [0], [1], [0, 0, 1, 1], [], []>} : vector<8x64xbf16>, vector<64x256xbf16>, vector<8x256xf32> -> vector<8x256xf32>
    %31 = arith.addf %28, %30 : vector<8x256xf32>
    %32 = arith.negf %31 : vector<8x256xf32>
    %33 = math.exp %32 : vector<8x256xf32>
    %cst_12 = arith.constant 1.000000e+00 : f32
    %34 = vector.broadcast %cst_12 : f32 to vector<8x256xf32>
    %35 = arith.addf %34, %33 : vector<8x256xf32>
    %36 = arith.divf %34, %35 : vector<8x256xf32>
    %37 = vector.extract_strided_slice %31 {offsets = [0, 128], sizes = [8, 64], strides = [1, 1]} : vector<8x256xf32> to vector<8x64xf32>
    %38 = math.tanh %37 : vector<8x64xf32>
    %39 = vector.extract_strided_slice %36 {offsets = [0, 0], sizes = [8, 64], strides = [1, 1]} : vector<8x256xf32> to vector<8x64xf32>
    %40 = vector.extract_strided_slice %36 {offsets = [0, 64], sizes = [8, 64], strides = [1, 1]} : vector<8x256xf32> to vector<8x64xf32>
    %41 = vector.extract_strided_slice %36 {offsets = [0, 192], sizes = [8, 64], strides = [1, 1]} : vector<8x256xf32> to vector<8x64xf32>
    %42 = arith.mulf %40, %25 : vector<8x64xf32>
    %43 = arith.mulf %39, %38 : vector<8x64xf32>
    %44 = arith.addf %42, %43 : vector<8x64xf32>
    %45 = math.tanh %44 : vector<8x64xf32>
    %46 = arith.mulf %41, %45 : vector<8x64xf32>
    %47 = vector.extract_strided_slice %6 {offsets = [16, 0], sizes = [8, 256], strides = [1, 1]} : vector<64x256xf32> to vector<8x256xf32>
    %48 = arith.truncf %46 : vector<8x64xf32> to vector<8x64xbf16>
    %cst_13 = arith.constant dense<0.000000e+00> : vector<8x256xf32>
    %49 = tpu.matmul %48, %0, %cst_13 {dimension_numbers = #tpu.dot_dimension_numbers<[1], [0], [0], [1], [0, 0, 1, 1], [], []>} : vector<8x64xbf16>, vector<64x256xbf16>, vector<8x256xf32> -> vector<8x256xf32>
    %50 = arith.addf %47, %49 : vector<8x256xf32>
    %51 = arith.negf %50 : vector<8x256xf32>
    %52 = math.exp %51 : vector<8x256xf32>
    %cst_14 = arith.constant 1.000000e+00 : f32
    %53 = vector.broadcast %cst_14 : f32 to vector<8x256xf32>
    %54 = arith.addf %53, %52 : vector<8x256xf32>
    %55 = arith.divf %53, %54 : vector<8x256xf32>
    %56 = vector.extract_strided_slice %50 {offsets = [0, 128], sizes = [8, 64], strides = [1, 1]} : vector<8x256xf32> to vector<8x64xf32>
    %57 = math.tanh %56 : vector<8x64xf32>
    %58 = vector.extract_strided_slice %55 {offsets = [0, 0], sizes = [8, 64], strides = [1, 1]} : vector<8x256xf32> to vector<8x64xf32>
    %59 = vector.extract_strided_slice %55 {offsets = [0, 64], sizes = [8, 64], strides = [1, 1]} : vector<8x256xf32> to vector<8x64xf32>
    %60 = vector.extract_strided_slice %55 {offsets = [0, 192], sizes = [8, 64], strides = [1, 1]} : vector<8x256xf32> to vector<8x64xf32>
    %61 = arith.mulf %59, %44 : vector<8x64xf32>
    %62 = arith.mulf %58, %57 : vector<8x64xf32>
    %63 = arith.addf %61, %62 : vector<8x64xf32>
    %64 = math.tanh %63 : vector<8x64xf32>
    %65 = arith.mulf %60, %64 : vector<8x64xf32>
    %66 = vector.extract_strided_slice %6 {offsets = [24, 0], sizes = [8, 256], strides = [1, 1]} : vector<64x256xf32> to vector<8x256xf32>
    %67 = arith.truncf %65 : vector<8x64xf32> to vector<8x64xbf16>
    %cst_15 = arith.constant dense<0.000000e+00> : vector<8x256xf32>
    %68 = tpu.matmul %67, %0, %cst_15 {dimension_numbers = #tpu.dot_dimension_numbers<[1], [0], [0], [1], [0, 0, 1, 1], [], []>} : vector<8x64xbf16>, vector<64x256xbf16>, vector<8x256xf32> -> vector<8x256xf32>
    %69 = arith.addf %66, %68 : vector<8x256xf32>
    %70 = arith.negf %69 : vector<8x256xf32>
    %71 = math.exp %70 : vector<8x256xf32>
    %cst_16 = arith.constant 1.000000e+00 : f32
    %72 = vector.broadcast %cst_16 : f32 to vector<8x256xf32>
    %73 = arith.addf %72, %71 : vector<8x256xf32>
    %74 = arith.divf %72, %73 : vector<8x256xf32>
    %75 = vector.extract_strided_slice %69 {offsets = [0, 128], sizes = [8, 64], strides = [1, 1]} : vector<8x256xf32> to vector<8x64xf32>
    %76 = math.tanh %75 : vector<8x64xf32>
    %77 = vector.extract_strided_slice %74 {offsets = [0, 0], sizes = [8, 64], strides = [1, 1]} : vector<8x256xf32> to vector<8x64xf32>
    %78 = vector.extract_strided_slice %74 {offsets = [0, 64], sizes = [8, 64], strides = [1, 1]} : vector<8x256xf32> to vector<8x64xf32>
    %79 = vector.extract_strided_slice %74 {offsets = [0, 192], sizes = [8, 64], strides = [1, 1]} : vector<8x256xf32> to vector<8x64xf32>
    %80 = arith.mulf %78, %63 : vector<8x64xf32>
    %81 = arith.mulf %77, %76 : vector<8x64xf32>
    %82 = arith.addf %80, %81 : vector<8x64xf32>
    %83 = math.tanh %82 : vector<8x64xf32>
    %84 = arith.mulf %79, %83 : vector<8x64xf32>
    %85 = vector.extract_strided_slice %6 {offsets = [32, 0], sizes = [8, 256], strides = [1, 1]} : vector<64x256xf32> to vector<8x256xf32>
    %86 = arith.truncf %84 : vector<8x64xf32> to vector<8x64xbf16>
    %cst_17 = arith.constant dense<0.000000e+00> : vector<8x256xf32>
    %87 = tpu.matmul %86, %0, %cst_17 {dimension_numbers = #tpu.dot_dimension_numbers<[1], [0], [0], [1], [0, 0, 1, 1], [], []>} : vector<8x64xbf16>, vector<64x256xbf16>, vector<8x256xf32> -> vector<8x256xf32>
    %88 = arith.addf %85, %87 : vector<8x256xf32>
    %89 = arith.negf %88 : vector<8x256xf32>
    %90 = math.exp %89 : vector<8x256xf32>
    %cst_18 = arith.constant 1.000000e+00 : f32
    %91 = vector.broadcast %cst_18 : f32 to vector<8x256xf32>
    %92 = arith.addf %91, %90 : vector<8x256xf32>
    %93 = arith.divf %91, %92 : vector<8x256xf32>
    %94 = vector.extract_strided_slice %88 {offsets = [0, 128], sizes = [8, 64], strides = [1, 1]} : vector<8x256xf32> to vector<8x64xf32>
    %95 = math.tanh %94 : vector<8x64xf32>
    %96 = vector.extract_strided_slice %93 {offsets = [0, 0], sizes = [8, 64], strides = [1, 1]} : vector<8x256xf32> to vector<8x64xf32>
    %97 = vector.extract_strided_slice %93 {offsets = [0, 64], sizes = [8, 64], strides = [1, 1]} : vector<8x256xf32> to vector<8x64xf32>
    %98 = vector.extract_strided_slice %93 {offsets = [0, 192], sizes = [8, 64], strides = [1, 1]} : vector<8x256xf32> to vector<8x64xf32>
    %99 = arith.mulf %97, %82 : vector<8x64xf32>
    %100 = arith.mulf %96, %95 : vector<8x64xf32>
    %101 = arith.addf %99, %100 : vector<8x64xf32>
    %102 = math.tanh %101 : vector<8x64xf32>
    %103 = arith.mulf %98, %102 : vector<8x64xf32>
    %104 = vector.extract_strided_slice %6 {offsets = [40, 0], sizes = [8, 256], strides = [1, 1]} : vector<64x256xf32> to vector<8x256xf32>
    %105 = arith.truncf %103 : vector<8x64xf32> to vector<8x64xbf16>
    %cst_19 = arith.constant dense<0.000000e+00> : vector<8x256xf32>
    %106 = tpu.matmul %105, %0, %cst_19 {dimension_numbers = #tpu.dot_dimension_numbers<[1], [0], [0], [1], [0, 0, 1, 1], [], []>} : vector<8x64xbf16>, vector<64x256xbf16>, vector<8x256xf32> -> vector<8x256xf32>
    %107 = arith.addf %104, %106 : vector<8x256xf32>
    %108 = arith.negf %107 : vector<8x256xf32>
    %109 = math.exp %108 : vector<8x256xf32>
    %cst_20 = arith.constant 1.000000e+00 : f32
    %110 = vector.broadcast %cst_20 : f32 to vector<8x256xf32>
    %111 = arith.addf %110, %109 : vector<8x256xf32>
    %112 = arith.divf %110, %111 : vector<8x256xf32>
    %113 = vector.extract_strided_slice %107 {offsets = [0, 128], sizes = [8, 64], strides = [1, 1]} : vector<8x256xf32> to vector<8x64xf32>
    %114 = math.tanh %113 : vector<8x64xf32>
    %115 = vector.extract_strided_slice %112 {offsets = [0, 0], sizes = [8, 64], strides = [1, 1]} : vector<8x256xf32> to vector<8x64xf32>
    %116 = vector.extract_strided_slice %112 {offsets = [0, 64], sizes = [8, 64], strides = [1, 1]} : vector<8x256xf32> to vector<8x64xf32>
    %117 = vector.extract_strided_slice %112 {offsets = [0, 192], sizes = [8, 64], strides = [1, 1]} : vector<8x256xf32> to vector<8x64xf32>
    %118 = arith.mulf %116, %101 : vector<8x64xf32>
    %119 = arith.mulf %115, %114 : vector<8x64xf32>
    %120 = arith.addf %118, %119 : vector<8x64xf32>
    %121 = math.tanh %120 : vector<8x64xf32>
    %122 = arith.mulf %117, %121 : vector<8x64xf32>
    %123 = vector.extract_strided_slice %6 {offsets = [48, 0], sizes = [8, 256], strides = [1, 1]} : vector<64x256xf32> to vector<8x256xf32>
    %124 = arith.truncf %122 : vector<8x64xf32> to vector<8x64xbf16>
    %cst_21 = arith.constant dense<0.000000e+00> : vector<8x256xf32>
    %125 = tpu.matmul %124, %0, %cst_21 {dimension_numbers = #tpu.dot_dimension_numbers<[1], [0], [0], [1], [0, 0, 1, 1], [], []>} : vector<8x64xbf16>, vector<64x256xbf16>, vector<8x256xf32> -> vector<8x256xf32>
    %126 = arith.addf %123, %125 : vector<8x256xf32>
    %127 = arith.negf %126 : vector<8x256xf32>
    %128 = math.exp %127 : vector<8x256xf32>
    %cst_22 = arith.constant 1.000000e+00 : f32
    %129 = vector.broadcast %cst_22 : f32 to vector<8x256xf32>
    %130 = arith.addf %129, %128 : vector<8x256xf32>
    %131 = arith.divf %129, %130 : vector<8x256xf32>
    %132 = vector.extract_strided_slice %126 {offsets = [0, 128], sizes = [8, 64], strides = [1, 1]} : vector<8x256xf32> to vector<8x64xf32>
    %133 = math.tanh %132 : vector<8x64xf32>
    %134 = vector.extract_strided_slice %131 {offsets = [0, 0], sizes = [8, 64], strides = [1, 1]} : vector<8x256xf32> to vector<8x64xf32>
    %135 = vector.extract_strided_slice %131 {offsets = [0, 64], sizes = [8, 64], strides = [1, 1]} : vector<8x256xf32> to vector<8x64xf32>
    %136 = vector.extract_strided_slice %131 {offsets = [0, 192], sizes = [8, 64], strides = [1, 1]} : vector<8x256xf32> to vector<8x64xf32>
    %137 = arith.mulf %135, %120 : vector<8x64xf32>
    %138 = arith.mulf %134, %133 : vector<8x64xf32>
    %139 = arith.addf %137, %138 : vector<8x64xf32>
    %140 = math.tanh %139 : vector<8x64xf32>
    %141 = arith.mulf %136, %140 : vector<8x64xf32>
    %142 = vector.extract_strided_slice %6 {offsets = [56, 0], sizes = [8, 256], strides = [1, 1]} : vector<64x256xf32> to vector<8x256xf32>
    %143 = arith.truncf %141 : vector<8x64xf32> to vector<8x64xbf16>
    %cst_23 = arith.constant dense<0.000000e+00> : vector<8x256xf32>
    %144 = tpu.matmul %143, %0, %cst_23 {dimension_numbers = #tpu.dot_dimension_numbers<[1], [0], [0], [1], [0, 0, 1, 1], [], []>} : vector<8x64xbf16>, vector<64x256xbf16>, vector<8x256xf32> -> vector<8x256xf32>
    %145 = arith.addf %142, %144 : vector<8x256xf32>
    %146 = arith.negf %145 : vector<8x256xf32>
    %147 = math.exp %146 : vector<8x256xf32>
    %cst_24 = arith.constant 1.000000e+00 : f32
    %148 = vector.broadcast %cst_24 : f32 to vector<8x256xf32>
    %149 = arith.addf %148, %147 : vector<8x256xf32>
    %150 = arith.divf %148, %149 : vector<8x256xf32>
    %151 = vector.extract_strided_slice %145 {offsets = [0, 128], sizes = [8, 64], strides = [1, 1]} : vector<8x256xf32> to vector<8x64xf32>
    %152 = math.tanh %151 : vector<8x64xf32>
    %153 = vector.extract_strided_slice %150 {offsets = [0, 0], sizes = [8, 64], strides = [1, 1]} : vector<8x256xf32> to vector<8x64xf32>
    %154 = vector.extract_strided_slice %150 {offsets = [0, 64], sizes = [8, 64], strides = [1, 1]} : vector<8x256xf32> to vector<8x64xf32>
    %155 = vector.extract_strided_slice %150 {offsets = [0, 192], sizes = [8, 64], strides = [1, 1]} : vector<8x256xf32> to vector<8x64xf32>
    %156 = arith.mulf %154, %139 : vector<8x64xf32>
    %157 = arith.mulf %153, %152 : vector<8x64xf32>
    %158 = arith.addf %156, %157 : vector<8x64xf32>
    %159 = math.tanh %158 : vector<8x64xf32>
    %160 = arith.mulf %155, %159 : vector<8x64xf32>
    %161 = arith.truncf %160 : vector<8x64xf32> to vector<8x64xbf16>
    %c0_25 = arith.constant 0 : index
    %c0_26 = arith.constant 0 : index
    %162 = vector.load %arg4[%c0_25, %c0_26] : memref<64x128xbf16, #tpu.memory_space<vmem>>, vector<64x128xbf16>
    %cst_27 = arith.constant dense<0.000000e+00> : vector<8x128xf32>
    %163 = tpu.matmul %161, %162, %cst_27 {dimension_numbers = #tpu.dot_dimension_numbers<[1], [0], [0], [1], [0, 0, 1, 1], [], []>} : vector<8x64xbf16>, vector<64x128xbf16>, vector<8x128xf32> -> vector<8x128xf32>
    %c0_28 = arith.constant 0 : index
    %c0_29 = arith.constant 0 : index
    %164 = vector.load %arg5[%c0_28, %c0_29] : memref<1x128xf32, #tpu.memory_space<vmem>>, vector<1x128xf32>
    %165 = vector.broadcast %164 : vector<1x128xf32> to vector<8x128xf32>
    %166 = arith.addf %163, %165 : vector<8x128xf32>
    %cst_30 = arith.constant dense<0xFF800000> : vector<8xf32>
    %167 = vector.multi_reduction <maximumf>, %166, %cst_30 [1] : vector<8x128xf32> to vector<8xf32>
    %168 = vector.shape_cast %167 : vector<8xf32> to vector<8x1xf32>
    %169 = vector.broadcast %168 : vector<8x1xf32> to vector<8x128xf32>
    %170 = arith.subf %166, %169 : vector<8x128xf32>
    %171 = math.exp %170 : vector<8x128xf32>
    %cst_31 = arith.constant dense<0.000000e+00> : vector<8xf32>
    %172 = vector.multi_reduction <add>, %171, %cst_31 [1] : vector<8x128xf32> to vector<8xf32>
    %173 = vector.shape_cast %172 : vector<8xf32> to vector<8x1xf32>
    %174 = vector.broadcast %173 : vector<8x1xf32> to vector<8x128xf32>
    %175 = arith.divf %171, %174 : vector<8x128xf32>
    %c0_32 = arith.constant 0 : index
    %c0_33 = arith.constant 0 : index
    %176 = vector.load %arg6[%c0_32, %c0_33] : memref<8x128xf32, #tpu.memory_space<vmem>>, vector<8x128xf32>
    tpu.vector_store %arg6[%c0_32, %c0_33], %175 {strides = array<i32>} : memref<8x128xf32, #tpu.memory_space<vmem>>, vector<8x128xf32>,
    return
  }
}

</mosaic_0001>

<bundles_post_ra>
// kernel: lstm_classifier_forward.1
= control target key start
LH: loop header
LB: loop body
LE: loop exit
PB: predicated region body
PF: predicated region fallthrough
CT: control target
= control target key end

     0   :  { %v1091_v1 = vmov 0   ;;  %vm96_vm0 = vcmask 261120   ;;  %v46_v14 = vlaneseq  ;;  %vm222_vm1 = vcmask 523264   ;;  %s1370_s3 = inlined_call_operand.vmem [shape: bf16[64,256], index: 3, kind: input, shape index: {}]   ;;  %s1371_s1 = inlined_call_operand.vmem [shape: bf16[32,256], index: 1, kind: input, shape index: {}]   ;;  %s1372_s0 = inlined_call_operand.vmem [shape: bf16[64,32], index: 0, kind: input, shape index: {}]   ;;  %s1373_s2 = inlined_call_operand.vmem [shape: f32[1,256], index: 2, kind: input, shape index: {}]   ;;  %s1374_s4 = inlined_call_operand.vmem [shape: bf16[64,128], index: 4, kind: input, shape index: {}]   ;;  %s1375_s5 = inlined_call_operand.vmem [shape: f32[1,128], index: 5, kind: input, shape index: {}]   ;;  %s1376_s6 = inlined_call_operand.vmem [shape: f32[8,128], index: 6, kind: output, shape index: {}]  }
   0x1   :  { %v1133_v0 = vld [vmem:[%s1370_s3 + $0x4] ss:$8 sps:$4 sm:$0xff]   ;;  %141 = vmatprep.mubr.bf16.mxu0 %v1091_v1  ;;  %258 = vmatprep.mubr.bf16.mxu1 %v1091_v1  ;;  %v1140_v2 = vld [vmem:[%s1370_s3] ss:$8 sps:$4 sm:$0xff]   ;;  %v1153_v5 = vld [vmem:[%s1370_s3 + $0x14] ss:$8 sps:$4 sm:$0xff]  }
   0x2   :  { %226 = vmatprep.subr.bf16.mxu1 %v1133_v0  ;;  %v968_v3 = vld [vmem:[%s1371_s1 + $0x4] ss:$8 sps:$4 sm:$0xff]   ;;  %v970_v4 = vld [vmem:[%s1371_s1] ss:$8 sps:$4 sm:$0xff]   ;;  %v1158_v6 = vld [vmem:[%s1370_s3 + $0x10] ss:$8 sps:$4 sm:$0xff]  }
   0x3   :  { %227 = vmatpush1.bf16.msra.mxu1 %v1140_v2  ;;  %109 = vmatprep.subr.bf16.mxu0 %v968_v3  ;;  %v974_v7 = vld [vmem:[%s1371_s1 + $0x14] ss:$8 sps:$4 sm:$0xff]   ;;  %v976_v8 = vld [vmem:[%s1371_s1 + $0x10] ss:$8 sps:$4 sm:$0xff]   ;;  %v1170_v9 = vld [vmem:[%s1370_s3 + $0x24] ss:$8 sps:$4 sm:$0xff]  }
   0x4   :  { %110 = vmatpush1.bf16.msra.mxu0 %v970_v4  ;;  %228 = vmatprep.subr.bf16.mxu1 %v1153_v5  ;;  %v1176_v10 = vld [vmem:[%s1370_s3 + $0x20] ss:$8 sps:$4 sm:$0xff]   ;;  %v1185_v12 = vld [vmem:[%s1370_s3 + $0x34] ss:$8 sps:$4 sm:$0xff]   ;;  %v1192_v13 = vld [vmem:[%s1370_s3 + $0x30] ss:$8 sps:$4 sm:$0xff]  }
   0x5   :  { %111 = vmatprep.subr.bf16.mxu0 %v974_v7  ;;  %v980_v11 = vld [vmem:[%s1372_s0] sm:$0xff]   ;;  %v47_v15 = vshrl.u32 %v46_v14, 7  ;;  %v984_v3 = vld [vmem:[%s1372_s0 + $0x8] sm:$0xff]   ;;  %v985_v4 = vld [vmem:[%s1372_s0 + $0x10] sm:$0xff]   ;;  %vm1094_vm2 = vmmov 0  }
   0x6   :  { %v44_v17 = vld [vmem:[%s1373_s2] sm:$0x3]  ;;  %s1092_s2 = smov 64   ;;  %v986_v7 = vld [vmem:[%s1372_s0 + $0x18] sm:$0xff]  }
   0x7   :  { %229 = vmatpush1.bf16.msra.mxu1 %v1158_v6  ;;  %v48_v16 = vsub.s32 0, %v47_v15  ;;  %v52_v18 = vsub.s32 1, %v47_v15 }
   0x8   :  { %230 = vmatprep.subr.bf16.mxu1 %v1170_v9  ;;  %112 = vmatpush1.bf16.msra.mxu0 %v976_v8 }
   0x9   :  { %370 = vmatprep.subr.bf16.mxu0 %v1133_v0  ;;  %v1220_v19 = vrot.slane %v44_v17, %v48_v16  ;;  %v1222_v21 = vrot.slane %v44_v17, %v52_v18 }
   0xb   :  { %231 = vmatpush1.bf16.msra.mxu1 %v1176_v10  ;;  %903 = vmatmul.mubr.msk.bf16.vlgmr.msra.gmra.mrb[0].mxu0 %vm96_vm0, %v980_v11 }
   0xc   :  { %232 = vmatprep.subr.bf16.mxu1 %v1185_v12  ;;  %371 = vmatpush1.bf16.msra.mxu0 %v1140_v2 }
   0xd   :  { %151 = vmatprep.mubr.bf16.mxu0 %v1091_v1  ;;  %372 = vmatprep.subr.bf16.mxu0 %v1153_v5 }
   0xf   :  { %233 = vmatpush1.bf16.msra.mxu1 %v1192_v13 }
  0x10   :  { %298 = vmatprep.subr.bf16.mxu1 %v1133_v0  ;;  %373 = vmatpush1.bf16.msra.mxu0 %v1158_v6 }
  0x11   :  { %374 = vmatprep.subr.bf16.mxu0 %v1170_v9 }
  0x12   :  { %259 = vmatmul.mubr.bf16.vlgmr.msra.gmra.mrb[0].mxu1 %v1091_v1 }
  0x13   :  { %299 = vmatpush1.bf16.msra.mxu1 %v1140_v2  ;;  %330 = vmatprep.mubr.bf16.mxu1 %v1091_v1 }
  0x14   :  { %300 = vmatprep.subr.bf16.mxu1 %v1153_v5  ;;  %375 = vmatpush1.bf16.msra.mxu0 %v1176_v10 }
  0x15   :  { %376 = vmatprep.subr.bf16.mxu0 %v1185_v12  ;;  %904 = vmatmul.mubr.msk.bf16.gmra.mrb[4].mxu0 %vm96_vm0, %v984_v3 }
  0x16   :  { %161 = vmatprep.mubr.bf16.mxu0 %v1091_v1 }
  0x17   :  { %301 = vmatpush1.bf16.msra.mxu1 %v1158_v6 }
  0x18   :  { %302 = vmatprep.subr.bf16.mxu1 %v1170_v9  ;;  %377 = vmatpush1.bf16.msra.mxu0 %v1192_v13 }
  0x19   :  { %514 = vmatprep.subr.bf16.mxu0 %v1133_v0 }
  0x1b   :  { %303 = vmatpush1.bf16.msra.mxu1 %v1176_v10 }
  0x1c   :  { %304 = vmatprep.subr.bf16.mxu1 %v1185_v12 }
  0x1d   :  { %905 = vmatmul.mubr.msk.bf16.gmra.mrb[8].mxu0 %vm96_vm0, %v985_v4 }
  0x1e   :  { %171 = vmatprep.mubr.bf16.mxu0 %v1091_v1 }
  0x1f   :  { %305 = vmatpush1.bf16.msra.mxu1 %v1192_v13 }
  0x20   :  { %442 = vmatprep.subr.bf16.mxu1 %v1133_v0 }
  0x25   :  { %906 = vmatmul.mubr.msk.bf16.gmra.mrb[12].mxu0 %vm96_vm0, %v986_v7 }
  0x26   :  { %402 = vmatprep.mubr.bf16.mxu0 %v1091_v1 }
  0xde   :  { %v143_v20 = vpop.f32.mrb[0].mxu0 }
  0xdf   :  { %v145_v22 = vpop.f32.mrb[1].mxu0  ;;  %v144_v24 = vadd.f32 %v143_v20, %v1220_v19 }
  0xe0   :  { %v147_v23 = vpop.f32.mrb[2].mxu0  ;;  %v146_v26 = vadd.f32 %v145_v22, %v1222_v21 }
  0xe1   :  { %v149_v25 = vpop.f32.mrb[3].mxu0  ;;  %v148_v50 = vadd.f32 %v147_v23, %v1220_v19 }
  0xe2   :  { %v150_v51 = vadd.f32 %v149_v25, %v1222_v21 }
  0xe5   :  { %v260_v27 = vpop.f32.mrb[0].mxu1 }
  0xe6   :  { %v267_v28 = vadd.f32 %v260_v27, %v144_v24  ;;  %v262_v29 = vpop.f32.mrb[1].mxu1 }
  0xe7   :  { %v268_v30 = vadd.f32 %v262_v29, %v146_v26  ;;  %v264_v31 = vpop.f32.mrb[2].mxu1 }
  0xe8   :  { %v915_v32 = vmul.f32 -1.442695, %v267_v28  ;;  %v265_v33 = vpop.f32.mrb[3].mxu1  ;;  %v153_v24 = vpop.f32.mrb[4].mxu0 }
  0xe9   :  { %v916_v39 = vmul.f32 -1.442695, %v268_v30  ;;  %v155_v25 = vpop.f32.mrb[5].mxu0 }
  0xea   :  { %991 = vpow2.f32 %v915_v32  ;;  %v1257_v26 = vpop.f32.mrb[6].mxu0 }
  0xeb   :  { %993 = vtanh.f32 %v268_v30  ;;  %v1259_v27 = vpop.f32.mrb[7].mxu0 }
  0xf0   :  { %v1261_v28 = vpop.f32.mrb[8].mxu0 }
  0xf1   :  { %v1263_v29 = vpop.f32.mrb[9].mxu0 }
  0xf2   :  { %v1265_v30 = vpop.f32.mrb[10].mxu0 }
  0xf3   :  { %v1267_v31 = vpop.f32.mrb[11].mxu0 }
  0xf4   :  { %v992_v34 = vpop.eup %991 }
  0xf5   :  { %v275_v35 = vadd.f32 1.0, %v992_v34  ;;  %v994_v36 = vpop.eup %993 }
  0xf7   :  { %995 = vrcp.f32 %v275_v35 }
  0xf8   :  { %997 = vpow2.f32 %v916_v39  ;;  %v1269_v32 = vpop.f32.mrb[12].mxu0 }
  0xf9   :  { %v1271_v33 = vpop.f32.mrb[13].mxu0 }
  0xfa   :  { %v1273_v34 = vpop.f32.mrb[14].mxu0 }
  0xfb   :  { %v1275_v35 = vpop.f32.mrb[15].mxu0 }
 0x101   :  { %v996_v37 = vpop.eup %995 }
 0x102   :  { %v283_v38 = vmul.f32 %v996_v37, %v994_v36  ;;  %v998_v40 = vpop.eup %997  ;;  %v282_v42 = vmul.f32 0.0, %v996_v37  ;;  %v154_v37 = vadd.f32 %v153_v24, %v1220_v19 }
 0x103   :  { %v276_v41 = vadd.f32 1.0, %v998_v40 }
 0x104   :  { %285 = vrot.lane.b32.xlu0 %v283_v38, %s1092_s2  ;;  %v156_v38 = vadd.f32 %v155_v25, %v1222_v21 }
 0x105   :  { %999 = vrcp.f32 %v276_v41 }
 0x10f   :  { %v1000_v45 = vpop.eup %999 }
 0x176   :  { %v286_v43 = vpop.permute.xlu0 %285 }
 0x177   :  { %v288_v44 = vadd.f32 %v286_v43, %v282_v42 }
 0x179   :  { %1001 = vtanh.f32 %v288_v44 }
 0x183   :  { %v1002_v46 = vpop.eup %1001 }
 0x184   :  { %v290_v47 = vmul.f32 %v1002_v46, %v1000_v45 }
 0x186   :  { %v291_v48 = vpack.c.bf16 %v290_v47, %v290_v47 }
 0x188   :  { %293 = vrot.lane.b32.xlu0 %v291_v48, %s1092_s2 }
 0x1fa   :  { %v294_v49 = vpop.permute.xlu0 %293 }
 0x1fb   :  { %917 = vmatmul.mubr.msk.bf16.vlgmr.msra.gmra.mrb[4].mxu1 %vm222_vm1, %v294_v49 }
 0x1fc   :  { %443 = vmatpush1.bf16.msra.mxu1 %v1140_v2  ;;  %474 = vmatprep.mubr.bf16.mxu1 %v1091_v1 }
 0x1fd   :  { %444 = vmatprep.subr.bf16.mxu1 %v1153_v5 }
 0x200   :  { %445 = vmatpush1.bf16.msra.mxu1 %v1158_v6 }
 0x201   :  { %446 = vmatprep.subr.bf16.mxu1 %v1170_v9 }
 0x204   :  { %447 = vmatpush1.bf16.msra.mxu1 %v1176_v10 }
 0x205   :  { %448 = vmatprep.subr.bf16.mxu1 %v1185_v12 }
 0x208   :  { %449 = vmatpush1.bf16.msra.mxu1 %v1192_v13 }
 0x209   :  { %586 = vmatprep.subr.bf16.mxu1 %v1133_v0 }
 0x2ce   :  { %v332_v52 = vpop.f32.mrb[4].mxu1 }
 0x2cf   :  { %v339_v53 = vadd.f32 %v332_v52, %v148_v50  ;;  %v334_v54 = vpop.f32.mrb[5].mxu1 }
 0x2d0   :  { %v340_v55 = vadd.f32 %v334_v54, %v150_v51  ;;  %v336_v56 = vpop.f32.mrb[6].mxu1 }
 0x2d1   :  { %v918_v57 = vmul.f32 -1.442695, %v339_v53  ;;  %v337_v58 = vpop.f32.mrb[7].mxu1 }
 0x2d2   :  { %v919_v8 = vmul.f32 -1.442695, %v340_v55 }
 0x2d3   :  { %1003 = vpow2.f32 %v918_v57 }
 0x2d4   :  { %1005 = vtanh.f32 %v340_v55 }
 0x2dd   :  { %v1004_v59 = vpop.eup %1003 }
 0x2de   :  { %v347_v60 = vadd.f32 1.0, %v1004_v59  ;;  %v1006_v61 = vpop.eup %1005 }
 0x2e0   :  { %1007 = vrcp.f32 %v347_v60 }
 0x2e1   :  { %1009 = vpow2.f32 %v919_v8 }
 0x2ea   :  { %v1008_v62 = vpop.eup %1007 }
 0x2eb   :  { %v355_v63 = vmul.f32 %v1008_v62, %v1006_v61  ;;  %v1010_v11 = vpop.eup %1009  ;;  %v354_v15 = vmul.f32 %v1008_v62, %v288_v44  ;;  %v158_v62 = vadd.f32 %v1257_v26, %v1220_v19 }
 0x2ec   :  { %v348_v14 = vadd.f32 1.0, %v1010_v11 }
 0x2ed   :  { %357 = vrot.lane.b32.xlu1 %v355_v63, %s1092_s2  ;;  %v160_v63 = vadd.f32 %v1259_v27, %v1222_v21 }
 0x2ee   :  { %1011 = vrcp.f32 %v348_v14 }
 0x2f8   :  { %v1012_v18 = vpop.eup %1011 }
 0x35f   :  { %v358_v16 = vpop.permute.xlu1 %357 }
 0x360   :  { %v360_v17 = vadd.f32 %v358_v16, %v354_v15 }
 0x362   :  { %1013 = vtanh.f32 %v360_v17 }
 0x36c   :  { %v1014_v20 = vpop.eup %1013 }
 0x36d   :  { %v362_v22 = vmul.f32 %v1014_v20, %v1012_v18 }
 0x36f   :  { %v363_v23 = vpack.c.bf16 %v362_v22, %v362_v22 }
 0x371   :  { %365 = vrot.lane.b32.xlu1 %v363_v23, %s1092_s2 }
 0x3e3   :  { %v366_v36 = vpop.permute.xlu1 %365 }
 0x3e4   :  { %920 = vmatmul.mubr.msk.bf16.vlgmr.msra.gmra.mrb[16].mxu0 %vm222_vm1, %v366_v36 }
 0x3e5   :  { %515 = vmatpush1.bf16.msra.mxu0 %v1140_v2  ;;  %546 = vmatprep.mubr.bf16.mxu0 %v1091_v1 }
 0x3e6   :  { %516 = vmatprep.subr.bf16.mxu0 %v1153_v5 }
 0x3e9   :  { %517 = vmatpush1.bf16.msra.mxu0 %v1158_v6 }
 0x3ea   :  { %518 = vmatprep.subr.bf16.mxu0 %v1170_v9 }
 0x3ed   :  { %519 = vmatpush1.bf16.msra.mxu0 %v1176_v10 }
 0x3ee   :  { %520 = vmatprep.subr.bf16.mxu0 %v1185_v12 }
 0x3f1   :  { %521 = vmatpush1.bf16.msra.mxu0 %v1192_v13 }
 0x3f2   :  { %658 = vmatprep.subr.bf16.mxu0 %v1133_v0 }
 0x4b7   :  { %v404_v39 = vpop.f32.mrb[16].mxu0 }
 0x4b8   :  { %v411_v40 = vadd.f32 %v404_v39, %v154_v37  ;;  %v406_v41 = vpop.f32.mrb[17].mxu0 }
 0x4b9   :  { %v412_v42 = vadd.f32 %v406_v41, %v156_v38  ;;  %v408_v43 = vpop.f32.mrb[18].mxu0  ;;  %v164_v41 = vadd.f32 %v1261_v28, %v1220_v19 }
 0x4ba   :  { %v921_v44 = vmul.f32 -1.442695, %v411_v40  ;;  %v409_v45 = vpop.f32.mrb[19].mxu0 }
 0x4bb   :  { %v922_v51 = vmul.f32 -1.442695, %v412_v42 }
 0x4bc   :  { %1015 = vpow2.f32 %v921_v44 }
 0x4bd   :  { %1017 = vtanh.f32 %v412_v42  ;;  %v166_v42 = vadd.f32 %v1263_v29, %v1222_v21 }
 0x4c6   :  { %v1016_v46 = vpop.eup %1015 }
 0x4c7   :  { %v419_v47 = vadd.f32 1.0, %v1016_v46  ;;  %v1018_v48 = vpop.eup %1017 }
 0x4c9   :  { %1019 = vrcp.f32 %v419_v47 }
 0x4ca   :  { %1021 = vpow2.f32 %v922_v51 }
 0x4d3   :  { %v1020_v49 = vpop.eup %1019 }
 0x4d4   :  { %v427_v50 = vmul.f32 %v1020_v49, %v1018_v48  ;;  %v1022_v52 = vpop.eup %1021  ;;  %v426_v54 = vmul.f32 %v1020_v49, %v360_v17 }
 0x4d5   :  { %v420_v53 = vadd.f32 1.0, %v1022_v52 }
 0x4d6   :  { %429 = vrot.lane.b32.xlu0 %v427_v50, %s1092_s2 }
 0x4d7   :  { %1023 = vrcp.f32 %v420_v53 }
 0x4e1   :  { %v1024_v57 = vpop.eup %1023 }
 0x548   :  { %v430_v55 = vpop.permute.xlu0 %429 }
 0x549   :  { %v432_v56 = vadd.f32 %v430_v55, %v426_v54 }
 0x54b   :  { %1025 = vtanh.f32 %v432_v56 }
 0x555   :  { %v1026_v58 = vpop.eup %1025 }
 0x556   :  { %v434_v59 = vmul.f32 %v1026_v58, %v1024_v57 }
 0x558   :  { %v435_v60 = vpack.c.bf16 %v434_v59, %v434_v59 }
 0x55a   :  { %437 = vrot.lane.b32.xlu1 %v435_v60, %s1092_s2 }
 0x5cc   :  { %v438_v61 = vpop.permute.xlu1 %437 }
 0x5cd   :  { %923 = vmatmul.mubr.msk.bf16.vlgmr.msra.gmra.mrb[8].mxu1 %vm222_vm1, %v438_v61 }
 0x5ce   :  { %587 = vmatpush1.bf16.msra.mxu1 %v1140_v2  ;;  %618 = vmatprep.mubr.bf16.mxu1 %v1091_v1 }
 0x5cf   :  { %588 = vmatprep.subr.bf16.mxu1 %v1153_v5 }
 0x5d2   :  { %589 = vmatpush1.bf16.msra.mxu1 %v1158_v6 }
 0x5d3   :  { %590 = vmatprep.subr.bf16.mxu1 %v1170_v9 }
 0x5d6   :  { %591 = vmatpush1.bf16.msra.mxu1 %v1176_v10 }
 0x5d7   :  { %592 = vmatprep.subr.bf16.mxu1 %v1185_v12 }
 0x5da   :  { %593 = vmatpush1.bf16.msra.mxu1 %v1192_v13 }
 0x5db   :  { %730 = vmatprep.subr.bf16.mxu1 %v1133_v0 }
 0x6a0   :  { %v476_v3 = vpop.f32.mrb[8].mxu1 }
 0x6a1   :  { %v483_v4 = vadd.f32 %v476_v3, %v158_v62  ;;  %v478_v7 = vpop.f32.mrb[9].mxu1  ;;  %v168_v3 = vadd.f32 %v1265_v30, %v1220_v19 }
 0x6a2   :  { %v484_v8 = vadd.f32 %v478_v7, %v160_v63  ;;  %v480_v11 = vpop.f32.mrb[10].mxu1 }
 0x6a3   :  { %v924_v14 = vmul.f32 -1.442695, %v483_v4  ;;  %v481_v15 = vpop.f32.mrb[11].mxu1 }
 0x6a4   :  { %v925_v22 = vmul.f32 -1.442695, %v484_v8 }
 0x6a5   :  { %1027 = vpow2.f32 %v924_v14 }
 0x6a6   :  { %1029 = vtanh.f32 %v484_v8 }
 0x6af   :  { %v1028_v16 = vpop.eup %1027 }
 0x6b0   :  { %v491_v17 = vadd.f32 1.0, %v1028_v16  ;;  %v1030_v18 = vpop.eup %1029 }
 0x6b2   :  { %1031 = vrcp.f32 %v491_v17 }
 0x6b3   :  { %1033 = vpow2.f32 %v925_v22 }
 0x6bc   :  { %v1032_v0 = vpop.eup %1031 }
 0x6bd   :  { %v499_v20 = vmul.f32 %v1032_v0, %v1030_v18  ;;  %v1034_v23 = vpop.eup %1033  ;;  %v498_v25 = vmul.f32 %v1032_v0, %v432_v56 }
 0x6be   :  { %v492_v24 = vadd.f32 1.0, %v1034_v23 }
 0x6bf   :  { %501 = vrot.lane.b32.xlu0 %v499_v20, %s1092_s2 }
 0x6c0   :  { %1035 = vrcp.f32 %v492_v24 }
 0x6ca   :  { %v1036_v36 = vpop.eup %1035 }
 0x731   :  { %v502_v26 = vpop.permute.xlu0 %501 }
 0x732   :  { %v504_v27 = vadd.f32 %v502_v26, %v498_v25  ;;  %v174_v25 = vadd.f32 %v1269_v32, %v1220_v19  ;;  %v176_v26 = vadd.f32 %v1271_v33, %v1222_v21 }
 0x734   :  { %1037 = vtanh.f32 %v504_v27 }
 0x73e   :  { %v1038_v37 = vpop.eup %1037 }
 0x73f   :  { %v506_v38 = vmul.f32 %v1038_v37, %v1036_v36 }
 0x741   :  { %v507_v39 = vpack.c.bf16 %v506_v38, %v506_v38 }
 0x743   :  { %509 = vrot.lane.b32.xlu1 %v507_v39, %s1092_s2 }
 0x7b5   :  { %v510_v40 = vpop.permute.xlu1 %509 }
 0x7b6   :  { %926 = vmatmul.mubr.msk.bf16.vlgmr.msra.gmra.mrb[20].mxu0 %vm222_vm1, %v510_v40 }
 0x7b7   :  { %659 = vmatpush1.bf16.msra.mxu0 %v1140_v2  ;;  %690 = vmatprep.mubr.bf16.mxu0 %v1091_v1 }
 0x7b8   :  { %660 = vmatprep.subr.bf16.mxu0 %v1153_v5 }
 0x7bb   :  { %661 = vmatpush1.bf16.msra.mxu0 %v1158_v6 }
 0x7bc   :  { %662 = vmatprep.subr.bf16.mxu0 %v1170_v9 }
 0x7bf   :  { %663 = vmatpush1.bf16.msra.mxu0 %v1176_v10 }
 0x7c0   :  { %664 = vmatprep.subr.bf16.mxu0 %v1185_v12 }
 0x7c3   :  { %665 = vmatpush1.bf16.msra.mxu0 %v1192_v13 }
 0x889   :  { %v548_v43 = vpop.f32.mrb[20].mxu0 }
 0x88a   :  { %v555_v44 = vadd.f32 %v548_v43, %v164_v41  ;;  %v550_v45 = vpop.f32.mrb[21].mxu0 }
 0x88b   :  { %v556_v46 = vadd.f32 %v550_v45, %v166_v42  ;;  %v552_v47 = vpop.f32.mrb[22].mxu0 }
 0x88c   :  { %v927_v48 = vmul.f32 -1.442695, %v555_v44  ;;  %v553_v49 = vpop.f32.mrb[23].mxu0 }
 0x88d   :  { %v928_v28 = vmul.f32 -1.442695, %v556_v46 }
 0x88e   :  { %1039 = vpow2.f32 %v927_v48 }
 0x88f   :  { %1041 = vtanh.f32 %v556_v46 }
 0x898   :  { %v1040_v50 = vpop.eup %1039 }
 0x899   :  { %v563_v51 = vadd.f32 1.0, %v1040_v50  ;;  %v1042_v52 = vpop.eup %1041 }
 0x89b   :  { %1043 = vrcp.f32 %v563_v51 }
 0x89c   :  { %1045 = vpow2.f32 %v928_v28 }
 0x8a5   :  { %v1044_v53 = vpop.eup %1043 }
 0x8a6   :  { %v571_v54 = vmul.f32 %v1044_v53, %v1042_v52  ;;  %v1046_v29 = vpop.eup %1045  ;;  %v570_v56 = vmul.f32 %v1044_v53, %v504_v27 }
 0x8a7   :  { %v564_v55 = vadd.f32 1.0, %v1046_v29  ;;  %v178_v29 = vadd.f32 %v1273_v34, %v1220_v19  ;;  %v1093_v19 = vmov 0.0   ;;  %v988_v34 = vld [vmem:[%s1374_s4 + $0x8] sm:$0xff]  }
 0x8a8   :  { %573 = vrot.lane.b32.xlu0 %v571_v54, %s1092_s2  ;;  %949 = vmatprep.subr.bf16.mxu0 %v1093_v19 }
 0x8a9   :  { %1047 = vrcp.f32 %v564_v55  ;;  %v180_v55 = vadd.f32 %v1275_v35, %v1222_v21  ;;  %v989_v35 = vld [vmem:[%s1374_s4 + $0x10] sm:$0xff]  }
 0x8b3   :  { %v1048_v59 = vpop.eup %1047 }
 0x91a   :  { %v574_v57 = vpop.permute.xlu0 %573 }
 0x91b   :  { %v576_v58 = vadd.f32 %v574_v57, %v570_v56 }
 0x91d   :  { %1049 = vtanh.f32 %v576_v58 }
 0x927   :  { %v1050_v60 = vpop.eup %1049 }
 0x928   :  { %v578_v61 = vmul.f32 %v1050_v60, %v1048_v59 }
 0x92a   :  { %v579_v62 = vpack.c.bf16 %v578_v61, %v578_v61 }
 0x92c   :  { %581 = vrot.lane.b32.xlu1 %v579_v62, %s1092_s2 }
 0x99e   :  { %v582_v63 = vpop.permute.xlu1 %581 }
 0x99f   :  { %929 = vmatmul.mubr.msk.bf16.vlgmr.msra.gmra.mrb[12].mxu1 %vm222_vm1, %v582_v63 }
 0x9a0   :  { %731 = vmatpush1.bf16.msra.mxu1 %v1140_v2  ;;  %762 = vmatprep.mubr.bf16.mxu1 %v1091_v1  ;;  %v170_v2 = vadd.f32 %v1267_v31, %v1222_v21  ;;  %v987_v21 = vld [vmem:[%s1374_s4] sm:$0xff]  }
 0x9a1   :  { %732 = vmatprep.subr.bf16.mxu1 %v1153_v5 }
 0x9a4   :  { %733 = vmatpush1.bf16.msra.mxu1 %v1158_v6 }
 0x9a5   :  { %734 = vmatprep.subr.bf16.mxu1 %v1170_v9 }
 0x9a8   :  { %735 = vmatpush1.bf16.msra.mxu1 %v1176_v10 }
 0x9a9   :  { %736 = vmatprep.subr.bf16.mxu1 %v1185_v12 }
 0x9ac   :  { %737 = vmatpush1.bf16.msra.mxu1 %v1192_v13 }
 0xa72   :  { %v620_v4 = vpop.f32.mrb[12].mxu1 }
 0xa73   :  { %v627_v1 = vadd.f32 %v620_v4, %v168_v3  ;;  %v622_v7 = vpop.f32.mrb[13].mxu1 }
 0xa74   :  { %v628_v5 = vadd.f32 %v622_v7, %v170_v2  ;;  %v624_v8 = vpop.f32.mrb[14].mxu1  ;;  %v990_v7 = vld [vmem:[%s1374_s4 + $0x18] sm:$0xff]  }
 0xa75   :  { %v930_v6 = vmul.f32 -1.442695, %v627_v1  ;;  %v625_v11 = vpop.f32.mrb[15].mxu1 }
 0xa76   :  { %v931_v30 = vmul.f32 -1.442695, %v628_v5 }
 0xa77   :  { %1051 = vpow2.f32 %v930_v6 }
 0xa78   :  { %1053 = vtanh.f32 %v628_v5 }
 0xa81   :  { %v1052_v9 = vpop.eup %1051 }
 0xa82   :  { %v635_v10 = vadd.f32 1.0, %v1052_v9  ;;  %v1054_v12 = vpop.eup %1053 }
 0xa84   :  { %1055 = vrcp.f32 %v635_v10 }
 0xa85   :  { %1057 = vpow2.f32 %v931_v30 }
 0xa8e   :  { %v1056_v13 = vpop.eup %1055 }
 0xa8f   :  { %v643_v14 = vmul.f32 %v1056_v13, %v1054_v12  ;;  %v1058_v31 = vpop.eup %1057  ;;  %v642_v16 = vmul.f32 %v1056_v13, %v576_v58 }
 0xa90   :  { %v636_v15 = vadd.f32 1.0, %v1058_v31 }
 0xa91   :  { %645 = vrot.lane.b32.xlu0 %v643_v14, %s1092_s2 }
 0xa92   :  { %1059 = vrcp.f32 %v636_v15  ;;  %v938_v15 = vld [vmem:[%s1375_s5] ss:$0 sm:$0xff] }
 0xa9c   :  { %v1060_v0 = vpop.eup %1059 }
 0xb03   :  { %v646_v17 = vpop.permute.xlu0 %645 }
 0xb04   :  { %v648_v18 = vadd.f32 %v646_v17, %v642_v16 }
 0xb06   :  { %1061 = vtanh.f32 %v648_v18 }
 0xb10   :  { %v1062_v20 = vpop.eup %1061 }
 0xb11   :  { %v650_v22 = vmul.f32 %v1062_v20, %v1060_v0 }
 0xb13   :  { %v651_v23 = vpack.c.bf16 %v650_v22, %v650_v22 }
 0xb15   :  { %653 = vrot.lane.b32.xlu1 %v651_v23, %s1092_s2 }
 0xb87   :  { %v654_v24 = vpop.permute.xlu1 %653 }
 0xb88   :  { %932 = vmatmul.mubr.msk.bf16.vlgmr.msra.gmra.mrb[24].mxu0 %vm222_vm1, %v654_v24 }
 0xb89   :  { %957 = vmatprep.mubr.msk.bf16.mxu0 %vm1094_vm2, %v1093_v19  ;;  %950 = vmatpush3.bf16.msra.mxu0 %v987_v21 }
 0xb8a   :  { %951 = vmatprep.subr.bf16.mxu0 %v1093_v19 }
 0xb8d   :  { %952 = vmatpush3.bf16.msra.mxu0 %v988_v34 }
 0xb8e   :  { %953 = vmatprep.subr.bf16.mxu0 %v1093_v19 }
 0xb91   :  { %954 = vmatpush3.bf16.msra.mxu0 %v989_v35 }
 0xb92   :  { %955 = vmatprep.subr.bf16.mxu0 %v1093_v19 }
 0xb95   :  { %956 = vmatpush3.bf16.msra.mxu0 %v990_v7 }
 0xc5b   :  { %v692_v27 = vpop.f32.mrb[24].mxu0 }
 0xc5c   :  { %v699_v36 = vadd.f32 %v692_v27, %v174_v25  ;;  %v694_v37 = vpop.f32.mrb[25].mxu0 }
 0xc5d   :  { %v700_v38 = vadd.f32 %v694_v37, %v176_v26  ;;  %v696_v39 = vpop.f32.mrb[26].mxu0 }
 0xc5e   :  { %v933_v40 = vmul.f32 -1.442695, %v699_v36  ;;  %v697_v41 = vpop.f32.mrb[27].mxu0 }
 0xc5f   :  { %v934_v32 = vmul.f32 -1.442695, %v700_v38 }
 0xc60   :  { %1063 = vpow2.f32 %v933_v40 }
 0xc61   :  { %1065 = vtanh.f32 %v700_v38 }
 0xc6a   :  { %v1064_v42 = vpop.eup %1063 }
 0xc6b   :  { %v707_v43 = vadd.f32 1.0, %v1064_v42  ;;  %v1066_v44 = vpop.eup %1065 }
 0xc6d   :  { %1067 = vrcp.f32 %v707_v43 }
 0xc6e   :  { %1069 = vpow2.f32 %v934_v32 }
 0xc77   :  { %v1068_v45 = vpop.eup %1067 }
 0xc78   :  { %v715_v46 = vmul.f32 %v1068_v45, %v1066_v44  ;;  %v1070_v33 = vpop.eup %1069  ;;  %v714_v48 = vmul.f32 %v1068_v45, %v648_v18 }
 0xc79   :  { %v708_v47 = vadd.f32 1.0, %v1070_v33 }
 0xc7a   :  { %717 = vrot.lane.b32.xlu0 %v715_v46, %s1092_s2 }
 0xc7b   :  { %1071 = vrcp.f32 %v708_v47 }
 0xc85   :  { %v1072_v51 = vpop.eup %1071 }
 0xcec   :  { %v718_v49 = vpop.permute.xlu0 %717 }
 0xced   :  { %v720_v50 = vadd.f32 %v718_v49, %v714_v48 }
 0xcef   :  { %1073 = vtanh.f32 %v720_v50 }
 0xcf9   :  { %v1074_v52 = vpop.eup %1073 }
 0xcfa   :  { %v722_v53 = vmul.f32 %v1074_v52, %v1072_v51 }
 0xcfc   :  { %v723_v54 = vpack.c.bf16 %v722_v53, %v722_v53 }
 0xcfe   :  { %725 = vrot.lane.b32.xlu1 %v723_v54, %s1092_s2 }
 0xd70   :  { %v726_v28 = vpop.permute.xlu1 %725 }
 0xd71   :  { %935 = vmatmul.mubr.msk.bf16.vlgmr.msra.gmra.mrb[16].mxu1 %vm222_vm1, %v726_v28 }
 0xe44   :  { %v764_v56 = vpop.f32.mrb[16].mxu1 }
 0xe45   :  { %v771_v57 = vadd.f32 %v764_v56, %v178_v29  ;;  %v766_v58 = vpop.f32.mrb[17].mxu1 }
 0xe46   :  { %v772_v59 = vadd.f32 %v766_v58, %v180_v55  ;;  %v768_v60 = vpop.f32.mrb[18].mxu1 }
 0xe47   :  { %v936_v61 = vmul.f32 -1.442695, %v771_v57  ;;  %v769_v62 = vpop.f32.mrb[19].mxu1 }
 0xe48   :  { %v937_v5 = vmul.f32 -1.442695, %v772_v59 }
 0xe49   :  { %1075 = vpow2.f32 %v936_v61 }
 0xe4a   :  { %1077 = vtanh.f32 %v772_v59 }
 0xe53   :  { %v1076_v63 = vpop.eup %1075 }
 0xe54   :  { %v779_v3 = vadd.f32 1.0, %v1076_v63  ;;  %v1078_v2 = vpop.eup %1077 }
 0xe56   :  { %1079 = vrcp.f32 %v779_v3 }
 0xe57   :  { %1081 = vpow2.f32 %v937_v5 }
 0xe60   :  { %v1080_v4 = vpop.eup %1079 }
 0xe61   :  { %v787_v1 = vmul.f32 %v1080_v4, %v1078_v2  ;;  %v1082_v8 = vpop.eup %1081  ;;  %v786_v11 = vmul.f32 %v1080_v4, %v720_v50 }
 0xe62   :  { %v780_v6 = vadd.f32 1.0, %v1082_v8 }
 0xe63   :  { %789 = vrot.lane.b32.xlu0 %v787_v1, %s1092_s2 }
 0xe64   :  { %1083 = vrcp.f32 %v780_v6 }
 0xe6e   :  { %v1084_v12 = vpop.eup %1083 }
 0xed5   :  { %v790_v9 = vpop.permute.xlu0 %789 }
 0xed6   :  { %v792_v10 = vadd.f32 %v790_v9, %v786_v11 }
 0xed8   :  { %1085 = vtanh.f32 %v792_v10 }
 0xee2   :  { %v1086_v13 = vpop.eup %1085 }
 0xee3   :  { %v794_v14 = vmul.f32 %v1086_v13, %v1084_v12 }
 0xee5   :  { %v795_v30 = vpack.c.bf16 %v794_v14, %v794_v14 }
 0xee7   :  { %812 = vrot.lane.b32.xlu1 %v795_v30, %s1092_s2 }
 0xf59   :  { %v813_v31 = vpop.permute.xlu1 %812 }
 0xf5a   :  { %958 = vmatmul.mubr.msk.bf16.vlgmr.msra.gmra.mrb[28].mxu0 %vm222_vm1, %v813_v31 }
0x102d   :  { %v875_v16 = vpop.f32.mrb[28].mxu0 }
0x102e   :  { %v876_v17 = vadd.f32 %v938_v15, %v875_v16  ;;  %v959_v18 = vpop.f32.mrb[29].mxu0 }
0x102f   :  { %v878_v0 = vpop.f32.mrb[30].mxu0 }
0x1030   :  { %881 = vmax.xlane.f32.xlu0 %v876_v17  ;;  %v960_v20 = vpop.f32.mrb[31].mxu0 }
0x10bd   :  { %v882_v22 = vpop.xlane.xlu0 %881 }
0x10be   :  { %v883_v23 = vsub.f32 %v876_v17, %v882_v22 }
0x10c0   :  { %v884_v24 = vmul.f32 1.442695, %v883_v23 }
0x10c2   :  { %1087 = vpow2.f32 %v884_v24 }
0x10cc   :  { %v1088_v25 = vpop.eup %1087 }
0x10cd   :  { %886 = vadd.xlane.f32.xlu1 %v1088_v25 }
0x115a   :  { %v887_v26 = vpop.xlane.xlu1 %886 }
0x115b   :  { %1089 = vrcp.f32 %v887_v26 }
0x1165   :  { %v1090_v27 = vpop.eup %1089 }
0x1166   :  { %v889_v36 = vmul.f32 %v1090_v27, %v1088_v25 }
0x1168   :  { %890 = vst [vmem:[%s1376_s6] sm:$0xff] %v889_v36 }

</bundles_post_ra>
